<compile_context>
chip_gen: v5e
topology: v5e:2x2
jax: 0.10.0
libtpu: 0.0.40
codegen_flags: <defaults>
</compile_context>

<pallas_src>
import jax
import jax.numpy as jnp
from jax.experimental import pallas as pl
from jax.experimental.pallas import tpu as pltpu

# ----------------------------- model config ---------------------------------
EMB_DIM = 8
SPARSE_FEATS = ["s0", "s1", "s2"]
SPARSE_VOCABS = {"s0": 50, "s1": 30, "s2": 20}
DENSE_FEATS = ["d0", "d1"]
DNN_HIDDEN = (32, 32)          # dnn_hidden_units
CROSS_NUM = 2                  # cross_num, parameterization='vector'
N_SPARSE = len(SPARSE_FEATS)
N_DENSE = len(DENSE_FEATS)
INPUT_DIM = N_SPARSE * EMB_DIM + N_DENSE   # 26
FINAL_DIM = INPUT_DIM + DNN_HIDDEN[-1]     # 58


# ------------------------------ Pallas kernel --------------------------------
def dcn_kernel(idx_ref, dense_ref, e0_ref, e1_ref, e2_ref,
               w1_ref, b1_ref, w2_ref, b2_ref,
               cw_ref, cb_ref, wlc_ref, wld_ref, out_ref):
    idx = idx_ref[...]                                    # (TB, NS) int32
    dense = dense_ref[...]                                # (TB, ND) f32

    # ---- embedding lookup fused in-kernel: one-hot (TB,V) @ table (V,E) on MXU
    parts = []
    for j, tbl_ref in enumerate((e0_ref, e1_ref, e2_ref)):
        vocab = tbl_ref.shape[0]
        iota = jax.lax.broadcasted_iota(jnp.int32, (1, vocab), 1)
        onehot = (idx[:, j:j + 1] == iota).astype(jnp.float32)      # (TB, V)
        parts.append(jnp.dot(onehot, tbl_ref[...],
                             preferred_element_type=jnp.float32))   # (TB, E)
    x = jnp.concatenate(parts + [dense], axis=-1)         # (TB, D)

    # ---- DNN tower: Linear -> ReLU -> Linear -> ReLU
    h = jnp.dot(x, w1_ref[...], preferred_element_type=jnp.float32) + b1_ref[...]
    h = jnp.maximum(h, 0.0)
    h = jnp.dot(h, w2_ref[...], preferred_element_type=jnp.float32) + b2_ref[...]
    h = jnp.maximum(h, 0.0)                               # (TB, H2)

    # ---- CrossNet ('vector'):  x_{l+1} = x0 * (x_l . w_l) + b_l + x_l
    x0 = x
    xl = x
    for i in range(CROSS_NUM):                            # static unroll
        xlw = jnp.dot(xl, cw_ref[:, i:i + 1],             # (TB, 1) MXU reduce
                      preferred_element_type=jnp.float32)
        xl = x0 * xlw + cb_ref[i:i + 1, :] + xl           # (TB, D)

    # ---- final head without lane-misaligned concat:
    #      logit = [cross | deep] @ wl == cross @ wl[:D] + deep @ wl[D:]
    out_ref[...] = (
        jnp.dot(xl, wlc_ref[...], preferred_element_type=jnp.float32)
        + jnp.dot(h, wld_ref[...], preferred_element_type=jnp.float32))


def _resident(shape):
    """Full-array block with a constant index_map -> stays resident in VMEM."""
    nd = len(shape)
    return pl.BlockSpec(shape, lambda i, _nd=nd: (0,) * _nd)


def dcn_forward_pallas(sparse_idx, dense, emb_tables, params, *, block_batch=512):
    """Fused DCN forward: gather + DNN + CrossNet + head in one Pallas kernel."""
    w1, b1, w2, b2, cw, cb, wlc, wld = params
    B = sparse_idx.shape[0]

    tb = min(block_batch, B)
    tb = max(8, ((tb + 7) // 8) * 8)          # sublane-aligned batch tile
    num_tiles = pl.cdiv(B, tb)
    b_pad = num_tiles * tb
    if b_pad != B:                            # pad ragged batch (sliced off below)
        sparse_idx = jnp.pad(sparse_idx, ((0, b_pad - B), (0, 0)))
        dense = jnp.pad(dense, ((0, b_pad - B), (0, 0)))

    weights = (emb_tables[0], emb_tables[1], emb_tables[2],
               w1, b1, w2, b2, cw, cb, wlc, wld)

    out = pl.pallas_call(
        dcn_kernel,
        out_shape=jax.ShapeDtypeStruct((b_pad, 1), jnp.float32),
        grid=(num_tiles,),
        in_specs=[pl.BlockSpec((tb, N_SPARSE), lambda i: (i, 0)),
                  pl.BlockSpec((tb, N_DENSE), lambda i: (i, 0))]
                 + [_resident(w.shape) for w in weights],
        out_specs=pl.BlockSpec((tb, 1), lambda i: (i, 0)),
        compiler_params=pltpu.CompilerParams(
            dimension_semantics=("parallel",)),   # sharded across v7x's 2 TCs
    )(sparse_idx, dense, *weights)
    return out[:B]


# ------------------------------- params / ref ---------------------------------
def make_params(key):
    keys = jax.random.split(key, 8)
    k = iter(keys)
    emb_tables = [
        0.01 * jax.random.normal(next(k), (SPARSE_VOCABS[f], EMB_DIM), jnp.float32)
        for f in SPARSE_FEATS
    ]
    w1 = 0.05 * jax.random.normal(next(k), (INPUT_DIM, DNN_HIDDEN[0]), jnp.float32)
    b1 = jnp.zeros((1, DNN_HIDDEN[0]), jnp.float32)
    w2 = 0.05 * jax.random.normal(next(k), (DNN_HIDDEN[0], DNN_HIDDEN[1]), jnp.float32)
    b2 = jnp.zeros((1, DNN_HIDDEN[1]), jnp.float32)
    cw = 0.05 * jax.random.normal(next(k), (INPUT_DIM, CROSS_NUM), jnp.float32)
    cb = jnp.zeros((CROSS_NUM, INPUT_DIM), jnp.float32)
    wl = 0.05 * jax.random.normal(next(k), (FINAL_DIM, 1), jnp.float32)
    wlc, wld = wl[:INPUT_DIM], wl[INPUT_DIM:]
    return emb_tables, (w1, b1, w2, b2, cw, cb, wlc, wld)


def dcn_reference(sparse_idx, dense, emb_tables, params):
    """Pure-JAX reference of the same forward pass."""
    w1, b1, w2, b2, cw, cb, wlc, wld = params
    embs = [emb_tables[j][sparse_idx[:, j]] for j in range(N_SPARSE)]
    x = jnp.concatenate(embs + [dense], axis=-1)
    h = jnp.maximum(x @ w1 + b1, 0.0)
    h = jnp.maximum(h @ w2 + b2, 0.0)
    x0 = xl = x
    for i in range(CROSS_NUM):
        xlw = xl @ cw[:, i:i + 1]
        xl = x0 * xlw + cb[i:i + 1, :] + xl
    return xl @ wlc + h @ wld


# --------------------------------- main ---------------------------------------
if __name__ == "__main__":
    key = jax.random.PRNGKey(0)
    pkey, ikey, dkey = jax.random.split(key, 3)
    emb_tables, params = make_params(pkey)

    def make_inputs(b, ik, dk):
        cols = [jax.random.randint(jax.random.fold_in(ik, j), (b,), 0,
                                   SPARSE_VOCABS[f]).astype(jnp.int32)
                for j, f in enumerate(SPARSE_FEATS)]
        sparse_idx = jnp.stack(cols, axis=1)                 # (b, 3) int32
        dense = jax.random.uniform(dk, (b, N_DENSE), dtype=jnp.float32)
        return sparse_idx, dense

    # single-tile case (B = 8)
    s8, d8 = make_inputs(8, ikey, dkey)
    out8 = dcn_forward_pallas(s8, d8, emb_tables, params)
    jax.block_until_ready(out8)
    ref8 = dcn_reference(s8, d8, emb_tables, params)
    assert out8.shape == (8, 1)
    assert jnp.allclose(out8, ref8, atol=1e-4, rtol=1e-4), (
        f"mismatch:\n{out8}\nvs\n{ref8}")

    # multi-tile + ragged batch case (B = 20, TB = 8 -> grid=(3,), pads to 24)
    s20, d20 = make_inputs(20, jax.random.fold_in(ikey, 99),
                           jax.random.fold_in(dkey, 99))
    out20 = dcn_forward_pallas(s20, d20, emb_tables, params, block_batch=8)
    jax.block_until_ready(out20)
    ref20 = dcn_reference(s20, d20, emb_tables, params)
    assert out20.shape == (20, 1)
    assert jnp.allclose(out20, ref20, atol=1e-4, rtol=1e-4), (
        f"mismatch:\n{out20}\nvs\n{ref20}")

    print("KERNEL_OK")
</pallas_src>

<mosaic_0001>
module attributes {stable_mosaic.version = 11 : i64} {
  func.func @dcn_kernel(%arg0: i32, %arg1: memref<8x3xi32, #tpu.memory_space<vmem>>, %arg2: memref<8x2xf32, #tpu.memory_space<vmem>>, %arg3: memref<50x8xf32, #tpu.memory_space<vmem>>, %arg4: memref<30x8xf32, #tpu.memory_space<vmem>>, %arg5: memref<20x8xf32, #tpu.memory_space<vmem>>, %arg6: memref<26x32xf32, #tpu.memory_space<vmem>>, %arg7: memref<1x32xf32, #tpu.memory_space<vmem>>, %arg8: memref<32x32xf32, #tpu.memory_space<vmem>>, %arg9: memref<1x32xf32, #tpu.memory_space<vmem>>, %arg10: memref<26x2xf32, #tpu.memory_space<vmem>>, %arg11: memref<2x26xf32, #tpu.memory_space<vmem>>, %arg12: memref<26x1xf32, #tpu.memory_space<vmem>>, %arg13: memref<32x1xf32, #tpu.memory_space<vmem>>, %arg14: memref<8x1xf32, #tpu.memory_space<vmem>>) attributes {dimension_semantics = [#tpu.dimension_semantics<parallel>], iteration_bounds = array<i64: 1>, scalar_prefetch = 0 : i64, scratch_operands = 0 : i64, tpu.core_type = #tpu.core_type<tc>, window_params = [{transform_indices = @transform_0, window_bounds = array<i64: 8, 3>}, {transform_indices = @transform_1, window_bounds = array<i64: 8, 2>}, {pipeline_mode = #tpu.pipeline_mode<synchronous>, transform_indices = @transform_2, window_bounds = array<i64: 50, 8>}, {pipeline_mode = #tpu.pipeline_mode<synchronous>, transform_indices = @transform_3, window_bounds = array<i64: 30, 8>}, {pipeline_mode = #tpu.pipeline_mode<synchronous>, transform_indices = @transform_4, window_bounds = array<i64: 20, 8>}, {pipeline_mode = #tpu.pipeline_mode<synchronous>, transform_indices = @transform_5, window_bounds = array<i64: 26, 32>}, {pipeline_mode = #tpu.pipeline_mode<synchronous>, transform_indices = @transform_6, window_bounds = array<i64: 1, 32>}, {pipeline_mode = #tpu.pipeline_mode<synchronous>, transform_indices = @transform_7, window_bounds = array<i64: 32, 32>}, {pipeline_mode = #tpu.pipeline_mode<synchronous>, transform_indices = @transform_8, window_bounds = array<i64: 1, 32>}, {pipeline_mode = #tpu.pipeline_mode<synchronous>, transform_indices = @transform_9, window_bounds = array<i64: 26, 2>}, {pipeline_mode = #tpu.pipeline_mode<synchronous>, transform_indices = @transform_10, window_bounds = array<i64: 2, 26>}, {pipeline_mode = #tpu.pipeline_mode<synchronous>, transform_indices = @transform_11, window_bounds = array<i64: 26, 1>}, {pipeline_mode = #tpu.pipeline_mode<synchronous>, transform_indices = @transform_12, window_bounds = array<i64: 32, 1>}, {transform_indices = @transform_13, window_bounds = array<i64: 8, 1>}]} {
    %c0 = arith.constant 0 : index
    %c0_0 = arith.constant 0 : index
    %0 = vector.load %arg1[%c0, %c0_0] : memref<8x3xi32, #tpu.memory_space<vmem>>, vector<8x3xi32>
    %c0_1 = arith.constant 0 : index
    %c0_2 = arith.constant 0 : index
    %1 = vector.load %arg2[%c0_1, %c0_2] : memref<8x2xf32, #tpu.memory_space<vmem>>, vector<8x2xf32>
    %2 = tpu.iota {dimensions = array<i32: 1>} : vector<1x50xi32>
    %3 = vector.extract_strided_slice %0 {offsets = [0, 0], sizes = [8, 1], strides = [1, 1]} : vector<8x3xi32> to vector<8x1xi32>
    %4 = vector.broadcast %3 : vector<8x1xi32> to vector<8x50xi32>
    %5 = vector.broadcast %2 : vector<1x50xi32> to vector<8x50xi32>
    %6 = arith.cmpi eq, %4, %5 : vector<8x50xi32>
    %7 = arith.extui %6 : vector<8x50xi1> to vector<8x50xi32>
    %8 = arith.sitofp %7 : vector<8x50xi32> to vector<8x50xf32>
    %c0_3 = arith.constant 0 : index
    %c0_4 = arith.constant 0 : index
    %9 = vector.load %arg3[%c0_3, %c0_4] : memref<50x8xf32, #tpu.memory_space<vmem>>, vector<50x8xf32>
    %cst = arith.constant dense<0.000000e+00> : vector<8x8xf32>
    %10 = tpu.matmul %8, %9, %cst {dimension_numbers = #tpu.dot_dimension_numbers<[1], [0], [0], [1], [0, 0, 1, 1], [], []>} : vector<8x50xf32>, vector<50x8xf32>, vector<8x8xf32> -> vector<8x8xf32>
    %11 = tpu.iota {dimensions = array<i32: 1>} : vector<1x30xi32>
    %12 = vector.extract_strided_slice %0 {offsets = [0, 1], sizes = [8, 1], strides = [1, 1]} : vector<8x3xi32> to vector<8x1xi32>
    %13 = vector.broadcast %12 : vector<8x1xi32> to vector<8x30xi32>
    %14 = vector.broadcast %11 : vector<1x30xi32> to vector<8x30xi32>
    %15 = arith.cmpi eq, %13, %14 : vector<8x30xi32>
    %16 = arith.extui %15 : vector<8x30xi1> to vector<8x30xi32>
    %17 = arith.sitofp %16 : vector<8x30xi32> to vector<8x30xf32>
    %c0_5 = arith.constant 0 : index
    %c0_6 = arith.constant 0 : index
    %18 = vector.load %arg4[%c0_5, %c0_6] : memref<30x8xf32, #tpu.memory_space<vmem>>, vector<30x8xf32>
    %cst_7 = arith.constant dense<0.000000e+00> : vector<8x8xf32>
    %19 = tpu.matmul %17, %18, %cst_7 {dimension_numbers = #tpu.dot_dimension_numbers<[1], [0], [0], [1], [0, 0, 1, 1], [], []>} : vector<8x30xf32>, vector<30x8xf32>, vector<8x8xf32> -> vector<8x8xf32>
    %20 = tpu.iota {dimensions = array<i32: 1>} : vector<1x20xi32>
    %21 = vector.extract_strided_slice %0 {offsets = [0, 2], sizes = [8, 1], strides = [1, 1]} : vector<8x3xi32> to vector<8x1xi32>
    %22 = vector.broadcast %21 : vector<8x1xi32> to vector<8x20xi32>
    %23 = vector.broadcast %20 : vector<1x20xi32> to vector<8x20xi32>
    %24 = arith.cmpi eq, %22, %23 : vector<8x20xi32>
    %25 = arith.extui %24 : vector<8x20xi1> to vector<8x20xi32>
    %26 = arith.sitofp %25 : vector<8x20xi32> to vector<8x20xf32>
    %c0_8 = arith.constant 0 : index
    %c0_9 = arith.constant 0 : index
    %27 = vector.load %arg5[%c0_8, %c0_9] : memref<20x8xf32, #tpu.memory_space<vmem>>, vector<20x8xf32>
    %cst_10 = arith.constant dense<0.000000e+00> : vector<8x8xf32>
    %28 = tpu.matmul %26, %27, %cst_10 {dimension_numbers = #tpu.dot_dimension_numbers<[1], [0], [0], [1], [0, 0, 1, 1], [], []>} : vector<8x20xf32>, vector<20x8xf32>, vector<8x8xf32> -> vector<8x8xf32>
    %29 = tpu.concatenate %10, %19, %28, %1 in 1 : vector<8x8xf32>, vector<8x8xf32>, vector<8x8xf32>, vector<8x2xf32> -> vector<8x26xf32>
    %c0_11 = arith.constant 0 : index
    %c0_12 = arith.constant 0 : index
    %30 = vector.load %arg6[%c0_11, %c0_12] : memref<26x32xf32, #tpu.memory_space<vmem>>, vector<26x32xf32>
    %cst_13 = arith.constant dense<0.000000e+00> : vector<8x32xf32>
    %31 = tpu.matmul %29, %30, %cst_13 {dimension_numbers = #tpu.dot_dimension_numbers<[1], [0], [0], [1], [0, 0, 1, 1], [], []>} : vector<8x26xf32>, vector<26x32xf32>, vector<8x32xf32> -> vector<8x32xf32>
    %c0_14 = arith.constant 0 : index
    %c0_15 = arith.constant 0 : index
    %32 = vector.load %arg7[%c0_14, %c0_15] : memref<1x32xf32, #tpu.memory_space<vmem>>, vector<1x32xf32>
    %33 = vector.broadcast %32 : vector<1x32xf32> to vector<8x32xf32>
    %34 = arith.addf %31, %33 : vector<8x32xf32>
    %cst_16 = arith.constant 0.000000e+00 : f32
    %35 = vector.broadcast %cst_16 : f32 to vector<8x32xf32>
    %36 = arith.maximumf %34, %35 : vector<8x32xf32>
    %c0_17 = arith.constant 0 : index
    %c0_18 = arith.constant 0 : index
    %37 = vector.load %arg8[%c0_17, %c0_18] : memref<32x32xf32, #tpu.memory_space<vmem>>, vector<32x32xf32>
    %cst_19 = arith.constant dense<0.000000e+00> : vector<8x32xf32>
    %38 = tpu.matmul %36, %37, %cst_19 {dimension_numbers = #tpu.dot_dimension_numbers<[1], [0], [0], [1], [0, 0, 1, 1], [], []>} : vector<8x32xf32>, vector<32x32xf32>, vector<8x32xf32> -> vector<8x32xf32>
    %c0_20 = arith.constant 0 : index
    %c0_21 = arith.constant 0 : index
    %39 = vector.load %arg9[%c0_20, %c0_21] : memref<1x32xf32, #tpu.memory_space<vmem>>, vector<1x32xf32>
    %40 = vector.broadcast %39 : vector<1x32xf32> to vector<8x32xf32>
    %41 = arith.addf %38, %40 : vector<8x32xf32>
    %cst_22 = arith.constant 0.000000e+00 : f32
    %42 = vector.broadcast %cst_22 : f32 to vector<8x32xf32>
    %43 = arith.maximumf %41, %42 : vector<8x32xf32>
    %c0_23 = arith.constant 0 : index
    %c0_24 = arith.constant 0 : index
    %44 = vector.load %arg10[%c0_23, %c0_24] : memref<26x2xf32, #tpu.memory_space<vmem>>, vector<26x1xf32>
    %cst_25 = arith.constant dense<0.000000e+00> : vector<8x1xf32>
    %45 = tpu.matmul %29, %44, %cst_25 {dimension_numbers = #tpu.dot_dimension_numbers<[1], [0], [0], [1], [0, 0, 1, 1], [], []>} : vector<8x26xf32>, vector<26x1xf32>, vector<8x1xf32> -> vector<8x1xf32>
    %46 = vector.broadcast %45 : vector<8x1xf32> to vector<8x26xf32>
    %47 = arith.mulf %29, %46 : vector<8x26xf32>
    %c0_26 = arith.constant 0 : index
    %c0_27 = arith.constant 0 : index
    %48 = vector.load %arg11[%c0_26, %c0_27] : memref<2x26xf32, #tpu.memory_space<vmem>>, vector<1x26xf32>
    %49 = vector.broadcast %48 : vector<1x26xf32> to vector<8x26xf32>
    %50 = arith.addf %47, %49 : vector<8x26xf32>
    %51 = arith.addf %50, %29 : vector<8x26xf32>
    %c0_28 = arith.constant 0 : index
    %c1 = arith.constant 1 : index
    %52 = vector.load %arg10[%c0_28, %c1] : memref<26x2xf32, #tpu.memory_space<vmem>>, vector<26x1xf32>
    %cst_29 = arith.constant dense<0.000000e+00> : vector<8x1xf32>
    %53 = tpu.matmul %51, %52, %cst_29 {dimension_numbers = #tpu.dot_dimension_numbers<[1], [0], [0], [1], [0, 0, 1, 1], [], []>} : vector<8x26xf32>, vector<26x1xf32>, vector<8x1xf32> -> vector<8x1xf32>
    %54 = vector.broadcast %53 : vector<8x1xf32> to vector<8x26xf32>
    %55 = arith.mulf %29, %54 : vector<8x26xf32>
    %c1_30 = arith.constant 1 : index
    %c0_31 = arith.constant 0 : index
    %56 = vector.load %arg11[%c1_30, %c0_31] : memref<2x26xf32, #tpu.memory_space<vmem>>, vector<1x26xf32>
    %57 = vector.broadcast %56 : vector<1x26xf32> to vector<8x26xf32>
    %58 = arith.addf %55, %57 : vector<8x26xf32>
    %59 = arith.addf %58, %51 : vector<8x26xf32>
    %c0_32 = arith.constant 0 : index
    %c0_33 = arith.constant 0 : index
    %60 = vector.load %arg12[%c0_32, %c0_33] : memref<26x1xf32, #tpu.memory_space<vmem>>, vector<26x1xf32>
    %cst_34 = arith.constant dense<0.000000e+00> : vector<8x1xf32>
    %61 = tpu.matmul %59, %60, %cst_34 {dimension_numbers = #tpu.dot_dimension_numbers<[1], [0], [0], [1], [0, 0, 1, 1], [], []>} : vector<8x26xf32>, vector<26x1xf32>, vector<8x1xf32> -> vector<8x1xf32>
    %c0_35 = arith.constant 0 : index
    %c0_36 = arith.constant 0 : index
    %62 = vector.load %arg13[%c0_35, %c0_36] : memref<32x1xf32, #tpu.memory_space<vmem>>, vector<32x1xf32>
    %cst_37 = arith.constant dense<0.000000e+00> : vector<8x1xf32>
    %63 = tpu.matmul %43, %62, %cst_37 {dimension_numbers = #tpu.dot_dimension_numbers<[1], [0], [0], [1], [0, 0, 1, 1], [], []>} : vector<8x32xf32>, vector<32x1xf32>, vector<8x1xf32> -> vector<8x1xf32>
    %64 = arith.addf %61, %63 : vector<8x1xf32>
    %c0_38 = arith.constant 0 : index
    %c0_39 = arith.constant 0 : index
    %65 = vector.load %arg14[%c0_38, %c0_39] : memref<8x1xf32, #tpu.memory_space<vmem>>, vector<8x1xf32>
    tpu.vector_store %arg14[%c0_38, %c0_39], %64 {strides = array<i32>} : memref<8x1xf32, #tpu.memory_space<vmem>>, vector<8x1xf32>,
    return
  }
  func.func @transform_0(%arg0: i32) -> (i32, i32) {
    %c0_i32 = arith.constant 0 : i32
    %c0_i32_0 = arith.constant 0 : i32
    return %arg0, %c0_i32 : i32, i32
  }
  func.func @transform_1(%arg0: i32) -> (i32, i32) {
    %c0_i32 = arith.constant 0 : i32
    %c0_i32_0 = arith.constant 0 : i32
    return %arg0, %c0_i32 : i32, i32
  }
  func.func @transform_2(%arg0: i32) -> (i32, i32) {
    %c0_i32 = arith.constant 0 : i32
    %c0_i32_0 = arith.constant 0 : i32
    %c0_i32_1 = arith.constant 0 : i32
    return %c0_i32, %c0_i32_0 : i32, i32
  }
  func.func @transform_3(%arg0: i32) -> (i32, i32) {
    %c0_i32 = arith.constant 0 : i32
    %c0_i32_0 = arith.constant 0 : i32
    %c0_i32_1 = arith.constant 0 : i32
    return %c0_i32, %c0_i32_0 : i32, i32
  }
  func.func @transform_4(%arg0: i32) -> (i32, i32) {
    %c0_i32 = arith.constant 0 : i32
    %c0_i32_0 = arith.constant 0 : i32
    %c0_i32_1 = arith.constant 0 : i32
    return %c0_i32, %c0_i32_0 : i32, i32
  }
  func.func @transform_5(%arg0: i32) -> (i32, i32) {
    %c0_i32 = arith.constant 0 : i32
    %c0_i32_0 = arith.constant 0 : i32
    %c0_i32_1 = arith.constant 0 : i32
    return %c0_i32, %c0_i32_0 : i32, i32
  }
  func.func @transform_6(%arg0: i32) -> (i32, i32) {
    %c0_i32 = arith.constant 0 : i32
    %c0_i32_0 = arith.constant 0 : i32
    %c0_i32_1 = arith.constant 0 : i32
    return %c0_i32, %c0_i32_0 : i32, i32
  }
  func.func @transform_7(%arg0: i32) -> (i32, i32) {
    %c0_i32 = arith.constant 0 : i32
    %c0_i32_0 = arith.constant 0 : i32
    %c0_i32_1 = arith.constant 0 : i32
    return %c0_i32, %c0_i32_0 : i32, i32
  }
  func.func @transform_8(%arg0: i32) -> (i32, i32) {
    %c0_i32 = arith.constant 0 : i32
    %c0_i32_0 = arith.constant 0 : i32
    %c0_i32_1 = arith.constant 0 : i32
    return %c0_i32, %c0_i32_0 : i32, i32
  }
  func.func @transform_9(%arg0: i32) -> (i32, i32) {
    %c0_i32 = arith.constant 0 : i32
    %c0_i32_0 = arith.constant 0 : i32
    %c0_i32_1 = arith.constant 0 : i32
    return %c0_i32, %c0_i32_0 : i32, i32
  }
  func.func @transform_10(%arg0: i32) -> (i32, i32) {
    %c0_i32 = arith.constant 0 : i32
    %c0_i32_0 = arith.constant 0 : i32
    %c0_i32_1 = arith.constant 0 : i32
    return %c0_i32, %c0_i32_0 : i32, i32
  }
  func.func @transform_11(%arg0: i32) -> (i32, i32) {
    %c0_i32 = arith.constant 0 : i32
    %c0_i32_0 = arith.constant 0 : i32
    %c0_i32_1 = arith.constant 0 : i32
    return %c0_i32, %c0_i32_0 : i32, i32
  }
  func.func @transform_12(%arg0: i32) -> (i32, i32) {
    %c0_i32 = arith.constant 0 : i32
    %c0_i32_0 = arith.constant 0 : i32
    %c0_i32_1 = arith.constant 0 : i32
    return %c0_i32, %c0_i32_0 : i32, i32
  }
  func.func @transform_13(%arg0: i32) -> (i32, i32) {
    %c0_i32 = arith.constant 0 : i32
    %c0_i32_0 = arith.constant 0 : i32
    return %arg0, %c0_i32 : i32, i32
  }
}

</mosaic_0001>

<bundles_post_ra>
// kernel: tpu_custom_call.1
= control target key start
LH: loop header
LB: loop body
LE: loop exit
PB: predicated region body
PF: predicated region fallthrough
CT: control target
= control target key end

     0   :  { %vm140_vm0 = vcmask 1043456   ;;  %v441_v0 = vmov 2   ;;  %v442_v4 = vmov 1   ;;  %vm103_vm1 = vcmask 1045504   ;;  %s445_s17 = smov 16   ;;  %s446_s18 = smov 8   ;;  %s660_s0 = inlined_call_operand.vmem [shape: s32[8,3], index: 0, kind: input, shape index: {}]   ;;  %s661_s4 = inlined_call_operand.vmem [shape: f32[20,8], index: 4, kind: input, shape index: {}]   ;;  %s662_s3 = inlined_call_operand.vmem [shape: f32[30,8], index: 3, kind: input, shape index: {}]   ;;  %s663_s2 = inlined_call_operand.vmem [shape: f32[50,8], index: 2, kind: input, shape index: {}]   ;;  %s664_s1 = inlined_call_operand.vmem [shape: f32[8,2], index: 1, kind: input, shape index: {}]   ;;  %s665_s9 = inlined_call_operand.vmem [shape: f32[26,2], index: 9, kind: input, shape index: {}]   ;;  %s666_s5 = inlined_call_operand.vmem [shape: f32[26,32], index: 5, kind: input, shape index: {}]   ;;  %s667_s6 = inlined_call_operand.vmem [shape: f32[1,32], index: 6, kind: input, shape index: {}]   ;;  %s668_s10 = inlined_call_operand.vmem [shape: f32[2,26], index: 10, kind: input, shape index: {}]   ;;  %s669_s7 = inlined_call_operand.vmem [shape: f32[32,32], index: 7, kind: input, shape index: {}]   ;;  %s670_s8 = inlined_call_operand.vmem [shape: f32[1,32], index: 8, kind: input, shape index: {}]   ;;  %s671_s12 = inlined_call_operand.vmem [shape: f32[32,1], index: 12, kind: input, shape index: {}]   ;;  %s672_s11 = inlined_call_operand.vmem [shape: f32[26,1], index: 11, kind: input, shape index: {}]   ;;  %s673_s13 = inlined_call_operand.vmem [shape: f32[8,1], index: 13, kind: output, shape index: {}]  }
   0x1   :  { %427 = vset.pattern.permute.xlu0 %v441_v0  ;;  %v44_v1 = vld [vmem:[%s660_s0] sm:$0xff]  ;;  %v135_v2 = vld [vmem:[%s661_s4 + $0x10] sm:$0xf]  ;;  %v134_v3 = vld [vmem:[%s661_s4 + $0x8] sm:$0xff]  ;;  %v443_v8 = vmov 0   ;;  %vm65_vm2 = vcmask 1041408   ;;  %v46_v17 = vlaneseq }
   0x2   :  { %128 = vperm.xlu0 %427, %v44_v1   ;;  %407 = vmatpush.msk.msra.mxu2 %vm140_vm0, %v135_v2  ;;  %v133_v5 = vld [vmem:[%s661_s4] sm:$0xff]  ;;  %v98_v6 = vld [vmem:[%s662_s3 + $0x18] sm:$0x3f]  ;;  %v97_v7 = vld [vmem:[%s662_s3 + $0x10] sm:$0xff]  ;;  %vm136_vm3 = vcmask 162816   ;;  %v444_v20 = vmov 0.0  }
   0x3   :  { %404 = vmatpush.msk.msra.mxu1 %vm103_vm1, %v98_v6  ;;  %429 = vset.pattern.permute.xlu1 %v443_v8  ;;  %v96_v9 = vld [vmem:[%s662_s3 + $0x8] sm:$0xff]  ;;  %v95_v10 = vld [vmem:[%s662_s3] sm:$0xff]  ;;  %v60_v11 = vld [vmem:[%s663_s2 + $0x30] sm:$0x3]  ;;  %v47_v18 = vand.u32 127, %v46_v17  ;;  %vm99_vm5 = vcmask 244736  }
   0x4   :  { %158 = vmatpush.msra.mxu2 %v134_v3  ;;  %49 = vperm.xlu1 %429, %v44_v1   ;;  %v59_v12 = vld [vmem:[%s663_s2 + $0x28] sm:$0xff]  ;;  %v58_v13 = vld [vmem:[%s663_s2 + $0x20] sm:$0xff]  ;;  %v57_v14 = vld [vmem:[%s663_s2 + $0x18] sm:$0xff]  ;;  %vm61_vm7 = vcmask 408576   ;;  %s447_s4 = smov 24   ;;  %s448_s29 = smov 127  }
   0x5   :  { %430 = vset.pattern.permute.xlu2 %v443_v8  ;;  %120 = vmatpush.msra.mxu1 %v97_v7  ;;  %v56_v15 = vld [vmem:[%s663_s2 + $0x10] sm:$0xff]  ;;  %v55_v16 = vld [vmem:[%s663_s2 + $0x8] sm:$0xff]  ;;  %v54_v24 = vld [vmem:[%s663_s2] sm:$0xff]  ;;  %vm176_vm9 = vcmask 64512   ;;  %vm178_vm10 = vcmask 130048   ;;  %vm180_vm11 = vcmask 195584  }
   0x6   :  { %159 = vmatpush.msra.mxu2 %v133_v5  ;;  %401 = vmatpush.msk.msra.mxu0 %vm65_vm2, %v60_v11  ;;  %v45_v29 = vld [vmem:[%s664_s1] sm:$0xff]  ;;  %v254_v30 = vld [vmem:[%s665_s9 + $0x18] sm:$0x3]  ;;  %v253_v32 = vld [vmem:[%s665_s9 + $0x10] sm:$0xff]  ;;  %vm190_vm12 = vcmask 211968   ;;  %vm226_vm13 = vcmask 261120  }
   0x7   :  { %121 = vmatpush.msra.mxu1 %v96_v9  ;;  %v185_v31 = vld [vmem:[%s666_s5 + $0x18] sm:$0x3]  ;;  %v184_v33 = vld [vmem:[%s666_s5 + $0x10] sm:$0xff]  ;;  %v252_v34 = vld [vmem:[%s665_s9 + $0x8] sm:$0xff]  ;;  %vm394_vm14 = vcmask 7168  }
   0x8   :  { %79 = vmatpush.msra.mxu0 %v59_v12  ;;  %409 = vmatpush.msk.msra.mxu3 %vm65_vm2, %v185_v31  ;;  %v431_v35 = vpack.i.bf16 %v252_v34, %v253_v32  ;;  %v183_v36 = vld [vmem:[%s666_s5 + $0x8] sm:$0xff]  ;;  %v251_v37 = vld [vmem:[%s665_s9] sm:$0xff]  ;;  %v221_v46 = vld [vmem:[%s669_s7 + $0x18] sm:$0xff] }
   0x9   :  { %122 = vmatpush.msra.mxu1 %v95_v10  ;;  %v182_v38 = vld [vmem:[%s666_s5] sm:$0xff]  ;;  %242 = vmatpush.msrb.mxu2 %v221_v46  ;;  %v220_v47 = vld [vmem:[%s669_s7 + $0x10] sm:$0xff]  ;;  %v219_v48 = vld [vmem:[%s669_s7 + $0x8] sm:$0xff] }
   0xa   :  { %428 = vset.pattern.permute.xlu0 %v442_v4  ;;  %80 = vmatpush.msra.mxu0 %v58_v13  ;;  %v218_v49 = vld [vmem:[%s669_s7] sm:$0xff]  ;;  %v344_v60 = vld [vmem:[%s671_s12 + $0x18] sm:$0xff]  ;;  %v343_v2 = vld [vmem:[%s671_s12 + $0x10] sm:$0xff] }
   0xb   :  { %90 = vperm.xlu0 %428, %v44_v1   ;;  %412 = vmatpush.msk.msrb.mxu1 %vm65_vm2, %v254_v30  ;;  %v437_v55 = vld [vmem:[%s667_s6] ss:$0 sm:$0xff]  ;;  %v342_v3 = vld [vmem:[%s671_s12 + $0x8] sm:$0xff]  ;;  %v340_v10 = vld [vmem:[%s672_s11 + $0x18] sm:$0x3] }
   0xc   :  { %81 = vmatpush.msra.mxu0 %v57_v14  ;;  %210 = vmatpush.msra.mxu3 %v184_v33  ;;  %v438_v61 = vld [vmem:[%s668_s10] ss:$0 sm:$0xff]  ;;  %v339_v11 = vld [vmem:[%s672_s11 + $0x10] sm:$0xff]  ;;  %v338_v12 = vld [vmem:[%s672_s11 + $0x8] sm:$0xff] }
   0xd   :  { %271 = vmatpush.msrb.mxu1 %v253_v32  ;;  %243 = vmatpush.msrb.mxu2 %v220_v47  ;;  %v341_v4 = vld [vmem:[%s671_s12] sm:$0xff] }
   0xe   :  { %82 = vmatpush.msra.mxu0 %v56_v15  ;;  %211 = vmatpush.msra.mxu3 %v183_v36  ;;  %v439_v5 = vld [vmem:[%s670_s8] ss:$0 sm:$0xff]  ;;  %v440_v14 = vld [vmem:[%s668_s10 + $0x1] ss:$0 sm:$0xff] }
   0xf   :  { %272 = vmatpush.msrb.mxu1 %v252_v34  ;;  %244 = vmatpush.msrb.mxu2 %v219_v48  ;;  %v337_v13 = vld [vmem:[%s672_s11] sm:$0xff] }
  0x10   :  { %83 = vmatpush.msra.mxu0 %v55_v16  ;;  %212 = vmatpush.msra.mxu3 %v182_v38 }
  0x11   :  { %273 = vmatpush.msrb.mxu1 %v251_v37  ;;  %245 = vmatpush.msrb.mxu2 %v218_v49 }
  0x12   :  { %84 = vmatpush.msra.mxu0 %v54_v24 }
  0x13   :  { %436 = vset.pattern.permute.xlu0 %v443_v8 }
  0x14   :  { %432 = vrot.lane.b32.xlu0 %v431_v35, %s448_s29  ;;  %360 = vmatpush.msrb.mxu0 %v344_v60 }
  0x16   :  { %361 = vmatpush.msrb.mxu0 %v343_v2 }
  0x18   :  { %362 = vmatpush.msrb.mxu0 %v342_v3 }
  0x1a   :  { %363 = vmatpush.msrb.mxu0 %v341_v4 }
  0x74   :  { %v129_v19 = vpop.permute.xlu0 %128 }
  0x75   :  { %vm130_vm4 = vcmp.eq.s32.totalorder %v129_v19, %v47_v18 }
  0x76   :  { %v406_v21 = vsel %vm130_vm4, 1.0, %v444_v20  ;;  %v50_v25 = vpop.permute.xlu1 %49 }
  0x77   :  { %408 = vmatmul.msk.f32.vlgmr.msra.gmra.mxu2 %vm136_vm3, %v406_v21  ;;  %vm51_vm8 = vcmp.eq.s32.totalorder %v50_v25, %v47_v18 }
  0x78   :  { %v400_v26 = vsel %vm51_vm8, 1.0, %v444_v20  ;;  %417 = vmatpush.msk.msra.mxu2 %vm65_vm2, %v340_v10 }
  0x79   :  { %402 = vmatmul.msk.f32.vlgmr.msra.gmra.mxu0 %vm61_vm7, %v400_v26 }
  0x7a   :  { %387 = vmatpush.msra.mxu2 %v339_v11 }
  0x7c   :  { %388 = vmatpush.msra.mxu2 %v338_v12 }
  0x7d   :  { %v91_v22 = vpop.permute.xlu0 %90 }
  0x7e   :  { %vm92_vm6 = vcmp.eq.s32.totalorder %v91_v22, %v47_v18  ;;  %389 = vmatpush.msra.mxu2 %v337_v13 }
  0x7f   :  { %v403_v23 = vsel %vm92_vm6, 1.0, %v444_v20 }
  0x80   :  { %405 = vmatmul.msk.f32.vlgmr.msra.gmra.mxu1 %vm99_vm5, %v403_v23 }
  0x86   :  { %v433_v51 = vpop.permute.xlu0 %432 }
  0x87   :  { %v435_v52 = vunpack.i.h.bf16 %v433_v51  ;;  %v434_v53 = vunpack.i.l.bf16 %v433_v51 }
  0xf6   :  { %v86_v40 = vpop.f32.mrf.mxu0 }
  0xfa   :  { %v161_v27 = vpop.f32.mrf.mxu2 }
  0xfb   :  { %169 = vrot.lane.b32.xlu2 %v161_v27, %s445_s17 }
  0xfd   :  { %v124_v28 = vpop.f32.mrf.mxu1 }
  0xfe   :  { %165 = vrot.lane.b32.xlu1 %v124_v28, %s446_s18 }
 0x103   :  { %173 = vrot.lane.b32.xlu2 %v45_v29, %s447_s4 }
 0x106   :  { %297 = vrot.lane.b32.xlu1 %v254_v30, %s448_s29 }
 0x10e   :  { %291 = vrot.lane.b32.xlu1 %v251_v37, %s448_s29 }
 0x155   :  { %v170_v39 = vpop.permute.xlu2 %169 }
 0x15d   :  { %v174_v42 = vpop.permute.xlu2 %173 }
 0x170   :  { %v166_v41 = vpop.permute.xlu1 %165 }
 0x171   :  { %v177_v43 = vsel %vm176_vm9, %v86_v40, %v166_v41 }
 0x172   :  { %v179_v44 = vsel %vm178_vm10, %v177_v43, %v170_v39 }
 0x173   :  { %v594_v45 = vsel %vm180_vm11, %v179_v44, %v174_v42 }
 0x174   :  { %410 = vmatmul.msk.f32.vlgmr.msra.gmra.mxu3 %vm190_vm12, %v594_v45  ;;  %413 = vmatmul.msk.f32.vlgmr.msrb.gmra.mxu1 %vm190_vm12, %v594_v45 }
 0x178   :  { %v298_v50 = vpop.permute.xlu1 %297 }
 0x179   :  { %414 = vmatpush.msk.msrb.mxu3 %vm65_vm2, %v298_v50 }
 0x17b   :  { %320 = vmatpush.msrb.mxu3 %v434_v53 }
 0x17d   :  { %321 = vmatpush.msrb.mxu3 %v435_v52 }
 0x180   :  { %v292_v59 = vpop.permute.xlu1 %291 }
 0x181   :  { %322 = vmatpush.msrb.mxu3 %v292_v59 }
 0x1f1   :  { %v275_v54 = vpop.f32.mrf.mxu1 }
 0x1f2   :  { %280 = vperm.xlu2 %430, %v275_v54  }
 0x1f7   :  { %v214_v56 = vpop.f32.mrf.mxu3 }
 0x1f8   :  { %v215_v57 = vadd.f32 %v437_v55, %v214_v56 }
 0x1fa   :  { %v217_v58 = vmax.f32 %v215_v57, 0.0 }
 0x1fc   :  { %411 = vmatmul.msk.f32.vlgmr.msrb.gmra.mxu2 %vm226_vm13, %v217_v58 }
 0x24c   :  { %v281_v62 = vpop.permute.xlu2 %280 }
 0x24d   :  { %v283_v63 = vmul.f32 %v281_v62, %v594_v45 }
 0x24f   :  { %v286_v0 = vadd.f32 %v438_v61, %v283_v63 }
 0x251   :  { %v287_v1 = vadd.f32 %v286_v0, %v594_v45 }
 0x253   :  { %415 = vmatmul.msk.f32.vlgmr.msrb.gmra.mxu3 %vm190_vm12, %v287_v1 }
 0x27f   :  { %v247_v6 = vpop.f32.mrf.mxu2 }
 0x280   :  { %v248_v7 = vadd.f32 %v439_v5, %v247_v6 }
 0x282   :  { %v250_v8 = vmax.f32 %v248_v7, 0.0 }
 0x284   :  { %416 = vmatmul.msk.f32.vlgmr.msrb.gmra.mxu0 %vm226_vm13, %v250_v8 }
 0x2d6   :  { %v324_v9 = vpop.f32.mrf.mxu3 }
 0x2d7   :  { %329 = vperm.xlu2 %430, %v324_v9  }
 0x301   :  { %v365_v19 = vpop.f32.mrf.mxu0 }
 0x331   :  { %v330_v15 = vpop.permute.xlu2 %329 }
 0x332   :  { %v332_v16 = vmul.f32 %v330_v15, %v594_v45 }
 0x334   :  { %v335_v17 = vadd.f32 %v440_v14, %v332_v16 }
 0x336   :  { %v336_v18 = vadd.f32 %v335_v17, %v287_v1 }
 0x338   :  { %418 = vmatmul.msk.f32.vlgmr.msra.gmra.mxu2 %vm190_vm12, %v336_v18 }
 0x3bb   :  { %v391_v20 = vpop.f32.mrf.mxu2 }
 0x3bc   :  { %v392_v21 = vadd.f32 %v391_v20, %v365_v19 }
 0x3be   :  { %395 = vst.msk [vmem:[%s673_s13] sm:$0xff] %vm394_vm14, %v392_v21 }

</bundles_post_ra>
